<compile_context>
chip_gen: v7x
topology: tpu7x:2x2x1
jax: 0.10.0
libtpu: 0.0.40
codegen_flags: <defaults>
</compile_context>

<pallas_src>
import functools
import math

import jax
import jax.numpy as jnp
from jax.experimental import pallas as pl
from jax.experimental.pallas import tpu as pltpu


def _round_up(x, m):
    return ((x + m - 1) // m) * m


def _tcn_kernel(x_ref, w_ref, v_ref, h_ref, o_ref, *, block_meta, K, M, C_pad):
    """Whole TCN (all TemporalBlocks + fused head) for one batch element.

    Carried activation `y` has a FIXED time extent T = M + L:
      rows [0, M)  : causal margin (zero on entry; finite garbage after the
                     first block; always re-masked to zero before each conv
                     and discarded by the wrapper).
      rows [M, T)  : the real sequence.
    Each causal tap = pltpu.roll of the masked input (rows move toward higher
    indices, np.roll semantics) + one aligned MXU matmul.  The zero margin
    that rolls into real rows is exactly PyTorch's "pad after BatchNorm"
    zeros; wrapped-around rows land only in the masked, discarded margin.
    """
    T = x_ref.shape[0]
    # Time mask, built once per grid step: False on margin rows, True on real rows.
    maskb = jax.lax.broadcasted_iota(jnp.int32, (T, 1), 0) >= M

    vp = v_ref[...]                        # (n_v, C_pad) packed per-channel vectors
    y = x_ref[...]                         # (T, C_pad) carried activation

    wi = 0                                 # static cursor into packed weights
    vi = 0                                 # static cursor into packed vectors
    for dilation, has_downsample in block_meta:
        scale1 = vp[vi + 0:vi + 1]
        shift1 = vp[vi + 1:vi + 2]
        b1 = vp[vi + 2:vi + 3]
        scale2 = vp[vi + 3:vi + 4]
        shift2 = vp[vi + 4:vi + 5]
        b2 = vp[vi + 5:vi + 6]
        vi += 6

        # ---- BatchNorm1d (eval) then causal zero pad (PyTorch pads AFTER BN).
        xb = jnp.where(maskb, y * scale1 + shift1, 0.0)

        # ---- conv1 + chomp1 + ReLU (dropout = identity in eval):
        # out[t] = sum_j W1[j] @ xb[t - (K-1-j)*dilation]; tap K-1 is unshifted.
        acc = jnp.dot(xb, w_ref[wi + K - 1], preferred_element_type=jnp.float32)
        for j in range(K - 1):
            xs = pltpu.roll(xb, (K - 1 - j) * dilation, axis=0)
            acc = acc + jnp.dot(xs, w_ref[wi + j],
                                preferred_element_type=jnp.float32)
        wi += K
        h1 = jnp.maximum(acc + b1, 0.0)

        # ---- BatchNorm2 + conv2 + chomp2 + ReLU.
        h1b = jnp.where(maskb, h1 * scale2 + shift2, 0.0)
        acc2 = jnp.dot(h1b, w_ref[wi + K - 1], preferred_element_type=jnp.float32)
        for j in range(K - 1):
            hs = pltpu.roll(h1b, (K - 1 - j) * dilation, axis=0)
            acc2 = acc2 + jnp.dot(hs, w_ref[wi + j],
                                  preferred_element_type=jnp.float32)
        wi += K
        h2 = jnp.maximum(acc2 + b2, 0.0)

        # ---- residual on the raw (pre-BN) block input, then final ReLU.
        if has_downsample:
            res = jnp.dot(y, w_ref[wi], preferred_element_type=jnp.float32) \
                + vp[vi:vi + 1]
            wi += 1
            vi += 1
        else:
            res = y
        y = jnp.maximum(h2 + res, 0.0)

    # ---- Head: Linear -> dropout(identity) -> Linear, pre-fused in the
    # wrapper; output zero-padded to 128 lanes so this store is a full-tile
    # (lane-dense) write.  Margin rows are written too (garbage) and sliced
    # off by the wrapper.
    w_head = h_ref[0:C_pad, :]             # (C_pad, OUT_PAD)
    b_head = h_ref[C_pad:C_pad + 1, :]     # (1, OUT_PAD)
    o_ref[...] = jnp.dot(y, w_head, preferred_element_type=jnp.float32) + b_head


def tcn_forward(params, x, *, kernel_size):
    """x: (N, C_in, L) as in the PyTorch module; returns out.squeeze()."""
    K = kernel_size
    N, c_in, L = x.shape
    blocks = params['blocks']
    nb = len(blocks)
    channels = [bp['w1'].shape[2] for bp in blocks]
    C_pad = _round_up(max([c_in] + channels), 8)

    # Fixed causal margin: >= the largest per-conv pad, sized so T is 8-row aligned.
    max_pad = (K - 1) * (2 ** (nb - 1))
    M = max_pad + ((-(max_pad + L)) % 8)
    T = M + L

    # ---- activations: (N, C, L) -> (N*T, C_pad) with zero margin rows and
    # zero channel padding.
    # TODO(synk): at realistic L fold this transpose/pad into the kernel (or
    # accept (N, L, C) input) to avoid the extra HBM pass.
    y = jnp.transpose(x, (0, 2, 1)).astype(jnp.float32)
    xp = jnp.pad(y, ((0, 0), (M, 0), (0, C_pad - c_in)))
    x2d = xp.reshape(N * T, C_pad)

    # ---- pack all weights / per-channel vectors into two flat arrays
    # (one DMA each instead of ~20 tiny operand DMAs).
    def pad_mat(w):
        w = w.astype(jnp.float32)
        return jnp.pad(w, ((0, C_pad - w.shape[0]), (0, C_pad - w.shape[1])))

    def pad_vec(v):
        v = v.astype(jnp.float32).reshape(-1)
        return jnp.pad(v, (0, C_pad - v.shape[0]))

    w_list, v_list, block_meta = [], [], []
    for i, bp in enumerate(blocks):
        has_ds = bp['wd'] is not None
        block_meta.append((2 ** i, has_ds))
        w_list += [pad_mat(bp['w1'][j]) for j in range(K)]
        w_list += [pad_mat(bp['w2'][j]) for j in range(K)]
        if has_ds:
            w_list.append(pad_mat(bp['wd']))
        v_list += [pad_vec(bp['scale1']), pad_vec(bp['shift1']), pad_vec(bp['b1']),
                   pad_vec(bp['scale2']), pad_vec(bp['shift2']), pad_vec(bp['b2'])]
        if has_ds:
            v_list.append(pad_vec(bp['bd']))
    wpack = jnp.stack(w_list)                       # (n_w, C_pad, C_pad)
    vpack = jnp.stack(v_list)                       # (n_v, C_pad)

    # ---- head: the two Linears have no nonlinearity between them (dropout is
    # identity in eval), so fuse them into one matmul; pad to >=128 output
    # lanes for a lane-dense final store.
    hp = params['head']
    out_size = hp['w2'].shape[1]
    OUT_PAD = _round_up(out_size, 128)
    w_f = jnp.dot(hp['w1'], hp['w2'])               # (C_last, out_size)
    b_f = jnp.dot(hp['b1'], hp['w2']) + hp['b2']    # (out_size,)
    hpack = jnp.zeros((C_pad + 1, OUT_PAD), jnp.float32)
    hpack = hpack.at[:w_f.shape[0], :out_size].set(w_f)
    hpack = hpack.at[C_pad, :out_size].set(b_f)

    kernel = functools.partial(_tcn_kernel, block_meta=tuple(block_meta),
                               K=K, M=M, C_pad=C_pad)
    # One grid step per batch element, marked "parallel" so v7x's second
    # TensorCore splits the batch; weight blocks use constant indices so they
    # are only DMA'd once per core.
    # TODO(synk): for long sequences also tile the time axis (budget against
    # v7x's 64 MiB VMEM, set vmem_limit_bytes explicitly) and feed the matmuls
    # bf16 activations/weights with f32 accumulation.
    out = pl.pallas_call(
        kernel,
        out_shape=jax.ShapeDtypeStruct((N * T, OUT_PAD), jnp.float32),
        grid=(N,),
        in_specs=[
            pl.BlockSpec((T, C_pad), lambda n: (n, 0)),
            pl.BlockSpec(wpack.shape, lambda n: (0, 0, 0)),
            pl.BlockSpec(vpack.shape, lambda n: (0, 0)),
            pl.BlockSpec(hpack.shape, lambda n: (0, 0)),
        ],
        out_specs=pl.BlockSpec((T, OUT_PAD), lambda n: (n, 0)),
        compiler_params=pltpu.CompilerParams(
            dimension_semantics=("parallel",)),
    )(x2d, wpack, vpack, hpack)

    # Drop the causal margin rows and the lane padding; match torch `.squeeze()`.
    out = out.reshape(N, T, OUT_PAD)[:, M:, :out_size]
    return jnp.squeeze(out)


def init_params(key, input_size, output_size, num_channels, fcl, kernel_size):
    eps = 1e-5
    params = {'blocks': []}
    in_ch = input_size
    for i, out_ch in enumerate(num_channels):
        key, k0, k1, k2, k3, k4, k5 = jax.random.split(key, 7)
        # Conv1d weights (kaiming_normal_; effective weight == v under weight_norm).
        # Stored per-tap as (K, Cin, Cout) == torch weight[:, :, j].T for each j.
        fan1 = in_ch * kernel_size
        w1 = math.sqrt(2.0 / fan1) * jax.random.normal(
            k0, (kernel_size, in_ch, out_ch), jnp.float32)
        b1 = jax.random.uniform(k1, (out_ch,), jnp.float32,
                                -1.0 / math.sqrt(fan1), 1.0 / math.sqrt(fan1))
        fan2 = out_ch * kernel_size
        w2 = math.sqrt(2.0 / fan2) * jax.random.normal(
            k2, (kernel_size, out_ch, out_ch), jnp.float32)
        b2 = jax.random.uniform(k3, (out_ch,), jnp.float32,
                                -1.0 / math.sqrt(fan2), 1.0 / math.sqrt(fan2))
        # BatchNorm1d eval fold: scale = w/sqrt(var+eps), shift = b - mean*scale.
        scale1 = jnp.full((in_ch,), 1.0 / math.sqrt(1.0 + eps), jnp.float32)
        shift1 = jnp.zeros((in_ch,), jnp.float32)
        scale2 = jnp.full((out_ch,), 1.0 / math.sqrt(1.0 + eps), jnp.float32)
        shift2 = jnp.zeros((out_ch,), jnp.float32)
        if in_ch != out_ch:
            wd = math.sqrt(2.0 / in_ch) * jax.random.normal(
                k4, (in_ch, out_ch), jnp.float32)
            bd = jax.random.uniform(k5, (out_ch,), jnp.float32,
                                    -1.0 / math.sqrt(in_ch), 1.0 / math.sqrt(in_ch))
        else:
            wd, bd = None, None
        params['blocks'].append(dict(w1=w1, b1=b1, w2=w2, b2=b2,
                                     scale1=scale1, shift1=shift1,
                                     scale2=scale2, shift2=shift2,
                                     wd=wd, bd=bd))
        in_ch = out_ch

    key, k1, k2, k3, k4 = jax.random.split(key, 5)
    c_last = num_channels[-1]
    b = 1.0 / math.sqrt(c_last)
    lw1 = jax.random.uniform(k1, (c_last, fcl), jnp.float32, -b, b)
    lb1 = jax.random.uniform(k2, (fcl,), jnp.float32, -b, b)
    bo = 1.0 / math.sqrt(fcl)
    lw2 = jax.random.uniform(k3, (fcl, output_size), jnp.float32, -bo, bo)
    lb2 = jax.random.uniform(k4, (output_size,), jnp.float32, -bo, bo)
    params['head'] = dict(w1=lw1, b1=lb1, w2=lw2, b2=lb2)
    return params


if __name__ == "__main__":
    key = jax.random.PRNGKey(0)
    pkey, xkey = jax.random.split(key)

    # TCN(input_size=8, output_size=4, num_channels=[16, 16], fcl=32,
    #     kernel_size=2, dropout=0.2) — small shapes consistent with the module.
    N, input_size, L = 2, 8, 16
    num_channels = [16, 16]
    fcl, output_size, kernel_size = 32, 4, 2

    params = init_params(pkey, input_size, output_size, num_channels, fcl, kernel_size)
    x = jax.random.normal(xkey, (N, input_size, L), jnp.float32)   # (N, C_in, L_in)

    out = tcn_forward(params, x, kernel_size=kernel_size)
    jax.block_until_ready(out)
    assert out.shape == (N, L, output_size)
    print("KERNEL_OK")
</pallas_src>

<mosaic_0001>
module attributes {stable_mosaic.version = 11 : i64} {
  func.func @_tcn_kernel(%arg0: i32, %arg1: memref<24x16xf32, #tpu.memory_space<vmem>>, %arg2: memref<9x16x16xf32, #tpu.memory_space<vmem>>, %arg3: memref<13x16xf32, #tpu.memory_space<vmem>>, %arg4: memref<17x128xf32, #tpu.memory_space<vmem>>, %arg5: memref<24x128xf32, #tpu.memory_space<vmem>>) attributes {dimension_semantics = [#tpu.dimension_semantics<parallel>], iteration_bounds = array<i64: 2>, scalar_prefetch = 0 : i64, scratch_operands = 0 : i64, tpu.core_type = #tpu.core_type<tc>, window_params = [{transform_indices = @transform_0, window_bounds = array<i64: 24, 16>}, {pipeline_mode = #tpu.pipeline_mode<synchronous>, transform_indices = @transform_1, window_bounds = array<i64: 9, 16, 16>}, {pipeline_mode = #tpu.pipeline_mode<synchronous>, transform_indices = @transform_2, window_bounds = array<i64: 13, 16>}, {pipeline_mode = #tpu.pipeline_mode<synchronous>, transform_indices = @transform_3, window_bounds = array<i64: 17, 128>}, {transform_indices = @transform_4, window_bounds = array<i64: 24, 128>}]} {
    %0 = tpu.iota {dimensions = array<i32: 0>} : vector<24x1xi32>
    %c8_i32 = arith.constant 8 : i32
    %1 = vector.broadcast %c8_i32 : i32 to vector<24x1xi32>
    %2 = arith.cmpi sge, %0, %1 : vector<24x1xi32>
    %c0 = arith.constant 0 : index
    %c0_0 = arith.constant 0 : index
    %3 = vector.load %arg3[%c0, %c0_0] : memref<13x16xf32, #tpu.memory_space<vmem>>, vector<13x16xf32>
    %c0_1 = arith.constant 0 : index
    %c0_2 = arith.constant 0 : index
    %4 = vector.load %arg1[%c0_1, %c0_2] : memref<24x16xf32, #tpu.memory_space<vmem>>, vector<24x16xf32>
    %5 = vector.extract_strided_slice %3 {offsets = [0, 0], sizes = [1, 16], strides = [1, 1]} : vector<13x16xf32> to vector<1x16xf32>
    %6 = vector.extract_strided_slice %3 {offsets = [1, 0], sizes = [1, 16], strides = [1, 1]} : vector<13x16xf32> to vector<1x16xf32>
    %7 = vector.extract_strided_slice %3 {offsets = [2, 0], sizes = [1, 16], strides = [1, 1]} : vector<13x16xf32> to vector<1x16xf32>
    %8 = vector.extract_strided_slice %3 {offsets = [3, 0], sizes = [1, 16], strides = [1, 1]} : vector<13x16xf32> to vector<1x16xf32>
    %9 = vector.extract_strided_slice %3 {offsets = [4, 0], sizes = [1, 16], strides = [1, 1]} : vector<13x16xf32> to vector<1x16xf32>
    %10 = vector.extract_strided_slice %3 {offsets = [5, 0], sizes = [1, 16], strides = [1, 1]} : vector<13x16xf32> to vector<1x16xf32>
    %11 = vector.broadcast %5 : vector<1x16xf32> to vector<24x16xf32>
    %12 = arith.mulf %4, %11 : vector<24x16xf32>
    %13 = vector.broadcast %6 : vector<1x16xf32> to vector<24x16xf32>
    %14 = arith.addf %12, %13 : vector<24x16xf32>
    %cst = arith.constant 0.000000e+00 : f32
    %15 = vector.shape_cast %2 : vector<24x1xi1> to vector<24x1xi1>
    %16 = vector.broadcast %15 : vector<24x1xi1> to vector<24x16xi1>
    %17 = vector.broadcast %cst : f32 to vector<24x16xf32>
    %18 = arith.select %16, %14, %17 : vector<24x16xi1>, vector<24x16xf32>
    %c1 = arith.constant 1 : index
    %c0_3 = arith.constant 0 : index
    %c0_4 = arith.constant 0 : index
    %19 = vector.load %arg2[%c1, %c0_3, %c0_4] : memref<9x16x16xf32, #tpu.memory_space<vmem>>, vector<1x16x16xf32>
    %20 = vector.shape_cast %19 : vector<1x16x16xf32> to vector<16x16xf32>
    %cst_5 = arith.constant dense<0.000000e+00> : vector<24x16xf32>
    %21 = tpu.matmul %18, %20, %cst_5 {dimension_numbers = #tpu.dot_dimension_numbers<[1], [0], [0], [1], [0, 0, 1, 1], [], []>} : vector<24x16xf32>, vector<16x16xf32>, vector<24x16xf32> -> vector<24x16xf32>
    %c1_i32 = arith.constant 1 : i32
    %22 = tpu.dynamic_rotate %18 by %c1_i32 dim 0 : vector<24x16xf32>, i32 -> vector<24x16xf32>
    %c0_6 = arith.constant 0 : index
    %c0_7 = arith.constant 0 : index
    %c0_8 = arith.constant 0 : index
    %23 = vector.load %arg2[%c0_6, %c0_7, %c0_8] : memref<9x16x16xf32, #tpu.memory_space<vmem>>, vector<1x16x16xf32>
    %24 = vector.shape_cast %23 : vector<1x16x16xf32> to vector<16x16xf32>
    %cst_9 = arith.constant dense<0.000000e+00> : vector<24x16xf32>
    %25 = tpu.matmul %22, %24, %cst_9 {dimension_numbers = #tpu.dot_dimension_numbers<[1], [0], [0], [1], [0, 0, 1, 1], [], []>} : vector<24x16xf32>, vector<16x16xf32>, vector<24x16xf32> -> vector<24x16xf32>
    %26 = arith.addf %21, %25 : vector<24x16xf32>
    %27 = vector.broadcast %7 : vector<1x16xf32> to vector<24x16xf32>
    %28 = arith.addf %26, %27 : vector<24x16xf32>
    %cst_10 = arith.constant 0.000000e+00 : f32
    %29 = vector.broadcast %cst_10 : f32 to vector<24x16xf32>
    %30 = arith.maximumf %28, %29 : vector<24x16xf32>
    %31 = vector.broadcast %8 : vector<1x16xf32> to vector<24x16xf32>
    %32 = arith.mulf %30, %31 : vector<24x16xf32>
    %33 = vector.broadcast %9 : vector<1x16xf32> to vector<24x16xf32>
    %34 = arith.addf %32, %33 : vector<24x16xf32>
    %cst_11 = arith.constant 0.000000e+00 : f32
    %35 = vector.shape_cast %2 : vector<24x1xi1> to vector<24x1xi1>
    %36 = vector.broadcast %35 : vector<24x1xi1> to vector<24x16xi1>
    %37 = vector.broadcast %cst_11 : f32 to vector<24x16xf32>
    %38 = arith.select %36, %34, %37 : vector<24x16xi1>, vector<24x16xf32>
    %c3 = arith.constant 3 : index
    %c0_12 = arith.constant 0 : index
    %c0_13 = arith.constant 0 : index
    %39 = vector.load %arg2[%c3, %c0_12, %c0_13] : memref<9x16x16xf32, #tpu.memory_space<vmem>>, vector<1x16x16xf32>
    %40 = vector.shape_cast %39 : vector<1x16x16xf32> to vector<16x16xf32>
    %cst_14 = arith.constant dense<0.000000e+00> : vector<24x16xf32>
    %41 = tpu.matmul %38, %40, %cst_14 {dimension_numbers = #tpu.dot_dimension_numbers<[1], [0], [0], [1], [0, 0, 1, 1], [], []>} : vector<24x16xf32>, vector<16x16xf32>, vector<24x16xf32> -> vector<24x16xf32>
    %c1_i32_15 = arith.constant 1 : i32
    %42 = tpu.dynamic_rotate %38 by %c1_i32_15 dim 0 : vector<24x16xf32>, i32 -> vector<24x16xf32>
    %c2 = arith.constant 2 : index
    %c0_16 = arith.constant 0 : index
    %c0_17 = arith.constant 0 : index
    %43 = vector.load %arg2[%c2, %c0_16, %c0_17] : memref<9x16x16xf32, #tpu.memory_space<vmem>>, vector<1x16x16xf32>
    %44 = vector.shape_cast %43 : vector<1x16x16xf32> to vector<16x16xf32>
    %cst_18 = arith.constant dense<0.000000e+00> : vector<24x16xf32>
    %45 = tpu.matmul %42, %44, %cst_18 {dimension_numbers = #tpu.dot_dimension_numbers<[1], [0], [0], [1], [0, 0, 1, 1], [], []>} : vector<24x16xf32>, vector<16x16xf32>, vector<24x16xf32> -> vector<24x16xf32>
    %46 = arith.addf %41, %45 : vector<24x16xf32>
    %47 = vector.broadcast %10 : vector<1x16xf32> to vector<24x16xf32>
    %48 = arith.addf %46, %47 : vector<24x16xf32>
    %cst_19 = arith.constant 0.000000e+00 : f32
    %49 = vector.broadcast %cst_19 : f32 to vector<24x16xf32>
    %50 = arith.maximumf %48, %49 : vector<24x16xf32>
    %c4 = arith.constant 4 : index
    %c0_20 = arith.constant 0 : index
    %c0_21 = arith.constant 0 : index
    %51 = vector.load %arg2[%c4, %c0_20, %c0_21] : memref<9x16x16xf32, #tpu.memory_space<vmem>>, vector<1x16x16xf32>
    %52 = vector.shape_cast %51 : vector<1x16x16xf32> to vector<16x16xf32>
    %cst_22 = arith.constant dense<0.000000e+00> : vector<24x16xf32>
    %53 = tpu.matmul %4, %52, %cst_22 {dimension_numbers = #tpu.dot_dimension_numbers<[1], [0], [0], [1], [0, 0, 1, 1], [], []>} : vector<24x16xf32>, vector<16x16xf32>, vector<24x16xf32> -> vector<24x16xf32>
    %54 = vector.extract_strided_slice %3 {offsets = [6, 0], sizes = [1, 16], strides = [1, 1]} : vector<13x16xf32> to vector<1x16xf32>
    %55 = vector.broadcast %54 : vector<1x16xf32> to vector<24x16xf32>
    %56 = arith.addf %53, %55 : vector<24x16xf32>
    %57 = arith.addf %50, %56 : vector<24x16xf32>
    %cst_23 = arith.constant 0.000000e+00 : f32
    %58 = vector.broadcast %cst_23 : f32 to vector<24x16xf32>
    %59 = arith.maximumf %57, %58 : vector<24x16xf32>
    %60 = vector.extract_strided_slice %3 {offsets = [7, 0], sizes = [1, 16], strides = [1, 1]} : vector<13x16xf32> to vector<1x16xf32>
    %61 = vector.extract_strided_slice %3 {offsets = [8, 0], sizes = [1, 16], strides = [1, 1]} : vector<13x16xf32> to vector<1x16xf32>
    %62 = vector.extract_strided_slice %3 {offsets = [9, 0], sizes = [1, 16], strides = [1, 1]} : vector<13x16xf32> to vector<1x16xf32>
    %63 = vector.extract_strided_slice %3 {offsets = [10, 0], sizes = [1, 16], strides = [1, 1]} : vector<13x16xf32> to vector<1x16xf32>
    %64 = vector.extract_strided_slice %3 {offsets = [11, 0], sizes = [1, 16], strides = [1, 1]} : vector<13x16xf32> to vector<1x16xf32>
    %65 = vector.extract_strided_slice %3 {offsets = [12, 0], sizes = [1, 16], strides = [1, 1]} : vector<13x16xf32> to vector<1x16xf32>
    %66 = vector.broadcast %60 : vector<1x16xf32> to vector<24x16xf32>
    %67 = arith.mulf %59, %66 : vector<24x16xf32>
    %68 = vector.broadcast %61 : vector<1x16xf32> to vector<24x16xf32>
    %69 = arith.addf %67, %68 : vector<24x16xf32>
    %cst_24 = arith.constant 0.000000e+00 : f32
    %70 = vector.shape_cast %2 : vector<24x1xi1> to vector<24x1xi1>
    %71 = vector.broadcast %70 : vector<24x1xi1> to vector<24x16xi1>
    %72 = vector.broadcast %cst_24 : f32 to vector<24x16xf32>
    %73 = arith.select %71, %69, %72 : vector<24x16xi1>, vector<24x16xf32>
    %c6 = arith.constant 6 : index
    %c0_25 = arith.constant 0 : index
    %c0_26 = arith.constant 0 : index
    %74 = vector.load %arg2[%c6, %c0_25, %c0_26] : memref<9x16x16xf32, #tpu.memory_space<vmem>>, vector<1x16x16xf32>
    %75 = vector.shape_cast %74 : vector<1x16x16xf32> to vector<16x16xf32>
    %cst_27 = arith.constant dense<0.000000e+00> : vector<24x16xf32>
    %76 = tpu.matmul %73, %75, %cst_27 {dimension_numbers = #tpu.dot_dimension_numbers<[1], [0], [0], [1], [0, 0, 1, 1], [], []>} : vector<24x16xf32>, vector<16x16xf32>, vector<24x16xf32> -> vector<24x16xf32>
    %c2_i32 = arith.constant 2 : i32
    %77 = tpu.dynamic_rotate %73 by %c2_i32 dim 0 : vector<24x16xf32>, i32 -> vector<24x16xf32>
    %c5 = arith.constant 5 : index
    %c0_28 = arith.constant 0 : index
    %c0_29 = arith.constant 0 : index
    %78 = vector.load %arg2[%c5, %c0_28, %c0_29] : memref<9x16x16xf32, #tpu.memory_space<vmem>>, vector<1x16x16xf32>
    %79 = vector.shape_cast %78 : vector<1x16x16xf32> to vector<16x16xf32>
    %cst_30 = arith.constant dense<0.000000e+00> : vector<24x16xf32>
    %80 = tpu.matmul %77, %79, %cst_30 {dimension_numbers = #tpu.dot_dimension_numbers<[1], [0], [0], [1], [0, 0, 1, 1], [], []>} : vector<24x16xf32>, vector<16x16xf32>, vector<24x16xf32> -> vector<24x16xf32>
    %81 = arith.addf %76, %80 : vector<24x16xf32>
    %82 = vector.broadcast %62 : vector<1x16xf32> to vector<24x16xf32>
    %83 = arith.addf %81, %82 : vector<24x16xf32>
    %cst_31 = arith.constant 0.000000e+00 : f32
    %84 = vector.broadcast %cst_31 : f32 to vector<24x16xf32>
    %85 = arith.maximumf %83, %84 : vector<24x16xf32>
    %86 = vector.broadcast %63 : vector<1x16xf32> to vector<24x16xf32>
    %87 = arith.mulf %85, %86 : vector<24x16xf32>
    %88 = vector.broadcast %64 : vector<1x16xf32> to vector<24x16xf32>
    %89 = arith.addf %87, %88 : vector<24x16xf32>
    %cst_32 = arith.constant 0.000000e+00 : f32
    %90 = vector.shape_cast %2 : vector<24x1xi1> to vector<24x1xi1>
    %91 = vector.broadcast %90 : vector<24x1xi1> to vector<24x16xi1>
    %92 = vector.broadcast %cst_32 : f32 to vector<24x16xf32>
    %93 = arith.select %91, %89, %92 : vector<24x16xi1>, vector<24x16xf32>
    %c8 = arith.constant 8 : index
    %c0_33 = arith.constant 0 : index
    %c0_34 = arith.constant 0 : index
    %94 = vector.load %arg2[%c8, %c0_33, %c0_34] : memref<9x16x16xf32, #tpu.memory_space<vmem>>, vector<1x16x16xf32>
    %95 = vector.shape_cast %94 : vector<1x16x16xf32> to vector<16x16xf32>
    %cst_35 = arith.constant dense<0.000000e+00> : vector<24x16xf32>
    %96 = tpu.matmul %93, %95, %cst_35 {dimension_numbers = #tpu.dot_dimension_numbers<[1], [0], [0], [1], [0, 0, 1, 1], [], []>} : vector<24x16xf32>, vector<16x16xf32>, vector<24x16xf32> -> vector<24x16xf32>
    %c2_i32_36 = arith.constant 2 : i32
    %97 = tpu.dynamic_rotate %93 by %c2_i32_36 dim 0 : vector<24x16xf32>, i32 -> vector<24x16xf32>
    %c7 = arith.constant 7 : index
    %c0_37 = arith.constant 0 : index
    %c0_38 = arith.constant 0 : index
    %98 = vector.load %arg2[%c7, %c0_37, %c0_38] : memref<9x16x16xf32, #tpu.memory_space<vmem>>, vector<1x16x16xf32>
    %99 = vector.shape_cast %98 : vector<1x16x16xf32> to vector<16x16xf32>
    %cst_39 = arith.constant dense<0.000000e+00> : vector<24x16xf32>
    %100 = tpu.matmul %97, %99, %cst_39 {dimension_numbers = #tpu.dot_dimension_numbers<[1], [0], [0], [1], [0, 0, 1, 1], [], []>} : vector<24x16xf32>, vector<16x16xf32>, vector<24x16xf32> -> vector<24x16xf32>
    %101 = arith.addf %96, %100 : vector<24x16xf32>
    %102 = vector.broadcast %65 : vector<1x16xf32> to vector<24x16xf32>
    %103 = arith.addf %101, %102 : vector<24x16xf32>
    %cst_40 = arith.constant 0.000000e+00 : f32
    %104 = vector.broadcast %cst_40 : f32 to vector<24x16xf32>
    %105 = arith.maximumf %103, %104 : vector<24x16xf32>
    %106 = arith.addf %105, %59 : vector<24x16xf32>
    %cst_41 = arith.constant 0.000000e+00 : f32
    %107 = vector.broadcast %cst_41 : f32 to vector<24x16xf32>
    %108 = arith.maximumf %106, %107 : vector<24x16xf32>
    %c0_42 = arith.constant 0 : index
    %c0_43 = arith.constant 0 : index
    %109 = vector.load %arg4[%c0_42, %c0_43] : memref<17x128xf32, #tpu.memory_space<vmem>>, vector<16x128xf32>
    %c16 = arith.constant 16 : index
    %c0_44 = arith.constant 0 : index
    %110 = vector.load %arg4[%c16, %c0_44] : memref<17x128xf32, #tpu.memory_space<vmem>>, vector<1x128xf32>
    %cst_45 = arith.constant dense<0.000000e+00> : vector<24x128xf32>
    %111 = tpu.matmul %108, %109, %cst_45 {dimension_numbers = #tpu.dot_dimension_numbers<[1], [0], [0], [1], [0, 0, 1, 1], [], []>} : vector<24x16xf32>, vector<16x128xf32>, vector<24x128xf32> -> vector<24x128xf32>
    %112 = vector.broadcast %110 : vector<1x128xf32> to vector<24x128xf32>
    %113 = arith.addf %111, %112 : vector<24x128xf32>
    %c0_46 = arith.constant 0 : index
    %c0_47 = arith.constant 0 : index
    %114 = vector.load %arg5[%c0_46, %c0_47] : memref<24x128xf32, #tpu.memory_space<vmem>>, vector<24x128xf32>
    tpu.vector_store %arg5[%c0_46, %c0_47], %113 {strides = array<i32>} : memref<24x128xf32, #tpu.memory_space<vmem>>, vector<24x128xf32>,
    return
  }
  func.func @transform_0(%arg0: i32) -> (i32, i32) {
    %c0_i32 = arith.constant 0 : i32
    %c0_i32_0 = arith.constant 0 : i32
    return %arg0, %c0_i32 : i32, i32
  }
  func.func @transform_1(%arg0: i32) -> (i32, i32, i32) {
    %c0_i32 = arith.constant 0 : i32
    %c0_i32_0 = arith.constant 0 : i32
    %c0_i32_1 = arith.constant 0 : i32
    %c0_i32_2 = arith.constant 0 : i32
    return %c0_i32, %c0_i32_0, %c0_i32_1 : i32, i32, i32
  }
  func.func @transform_2(%arg0: i32) -> (i32, i32) {
    %c0_i32 = arith.constant 0 : i32
    %c0_i32_0 = arith.constant 0 : i32
    %c0_i32_1 = arith.constant 0 : i32
    return %c0_i32, %c0_i32_0 : i32, i32
  }
  func.func @transform_3(%arg0: i32) -> (i32, i32) {
    %c0_i32 = arith.constant 0 : i32
    %c0_i32_0 = arith.constant 0 : i32
    %c0_i32_1 = arith.constant 0 : i32
    return %c0_i32, %c0_i32_0 : i32, i32
  }
  func.func @transform_4(%arg0: i32) -> (i32, i32) {
    %c0_i32 = arith.constant 0 : i32
    %c0_i32_0 = arith.constant 0 : i32
    return %arg0, %c0_i32 : i32, i32
  }
}

</mosaic_0001>

<bundles_post_ra>
// kernel: tpu_custom_call.1
= control target key start
LH: loop header
LB: loop body
LE: loop exit
PB: predicated region body
PF: predicated region fallthrough
CT: control target
= control target key end

     0   :  { %9 = vsyncpa [#allocation3], 0  ;;  %s2196_s0 = inlined_call_operand.vmem [shape: f32[48,16], index: 0, kind: input, shape index: {}]   ;;  %s2197_s1 = inlined_call_operand.hbm [shape: f32[9,16,16], index: 1, kind: input, shape index: {}]   ;;  %s2198_s2 = inlined_call_operand.vmem [shape: f32[13,16], index: 2, kind: input, shape index: {}]   ;;  %s2199_s3 = inlined_call_operand.vmem [shape: f32[17,128], index: 3, kind: input, shape index: {}]   ;;  %s2200_s4 = inlined_call_operand.hbm [shape: f32[48,128], index: 4, kind: output, shape index: {}]  }
   0x1   :  { %10 = vsyncpa [#allocation4], 0 }
   0x2   :  { %12 = vsyncpa [#allocation4 + $0x1], 0  ;;  %s1833_s15 = smov 0   ;;  %s1835_s16 = smov 0  }
   0x3   :  { %s1837_s17 = smov 0   ;;  %s1839_s18 = smov 0  }
   0x4 LB: > { %s1854_s19 = sadd.s32 4294967295, %s1797_s18   ;;  %s1397_s20 = sadd.s32 4294967294, %s1797_s18   ;;  %s1797_s18 = sphi %s1839_s18, %s2216_s18   ;;  %s1793_s17 = sphi %s1837_s17, %s2215_s17   ;;  %s1789_s16 = sphi %s1835_s16, %s2214_s16   ;;  %s1785_s15 = sphi %s1833_s15, %s2213_s15  }
   0x5   : > { %s1858_s21 = sadd.s32 1, %s1797_s18   ;;  %s114_s22 = sadd.s32 1, %s1793_s17 }
   0x6   : > { %s111_s23 = ssub.s32 %s1797_s18, %s1858_s21  ;;  %p124_p0 = scmp.ne.s32.totalorder %s1793_s17, %s1789_s16 }
   0x7   : > { %p112_p1 = scmp.eq.s32.totalorder %s111_s23, 0  ;;  %p125_p2 = scmp.eq.s32.totalorder %s1854_s19, 1 }
   0x8   : > { %p130_p3 = scmp.ne.s32.totalorder %s1789_s16, %s1785_s15  ;;  %p131_p4 = scmp.eq.s32.totalorder %s1397_s20, 1 }
   0x9   : > { %s1869_s24 = scalar_select %p112_p1, %s1793_s17, %s114_s22  }
   0xa   : > { %p1871_p5 = por %p125_p2, %p124_p0  ;;  %p1875_p6 = por %p131_p4, %p130_p3 }
   0xb   : > { %p1398_p7 = scmp.ge.s32.totalorder %s1797_s18, 1  ;;  %p138_p8 = scmp.lt.s32.totalorder %s1797_s18, 3 }
   0xc   : > { %s2204_s25 = scalar_select %p1871_p5, 1, 0 }
   0xd   : > { %s2205_s26 = scalar_select %p1875_p6, 1, 0 }
   0xe   : > { %p2201_p9 = scmp.eq.s32.totalorder %s1854_s19, 0  ;;  %p1882_p10 = pnand %p1398_p7, %p138_p8 }
   0xf   : > { %s1799_s28 = smov [#allocation2]   ;;  %s1703_s7 = scalar_lea.hbm %s2197_s1, 2304 }
  0x10   : > { %s2206_s27 = scalar_select %p1882_p10, 1, 0 }
  0x11   : > { %s150_s29 = sshll.u32 %s1799_s28, 4  ;;  %p1652_p11 = pneg %p1882_p10  ;;  %s151_s29 = int_to_ptr.vmem [resolvable:$true] %s150_s29 }
  0x12   : > { %p1704_p13 = scmp.ne.s32.totalorder %s2197_s1, %s1703_s7  ;;  %p1710_p3 = scmp.lt.u32.totalorder %s1703_s7, %s2197_s1 }
  0x13   : > { %p1890_p12 = pnand %p2201_p9, %p1652_p11 }
  0x15   : > { %p1705_p0 = pneg %p1890_p12 }
  0x17   : > { %p1706_p1 = pnand %p1705_p0, %p1704_p13 }
  0x19   : > { %p1707_p2 = pneg %p1706_p1 }
  0x1b   : > { %p1712_p4 = pnand %p1710_p3, %p1707_p2 }
  0x1d   : > { %1715 = shalt.err (!%p1712_p4)
}
  0x1e   : > { %s1716_s12 = scalar_lea.vmem %s151_s29, 2304  ;;  %p1724_p9 = scmp.lt.s32.totalorder %s151_s29, %s151_s29 }
  0x1f   : > { %p1717_p7 = scmp.ne.s32.totalorder %s151_s29, %s1716_s12  ;;  %p1725_p6 = scmp.lt.s32.totalorder %s1716_s12, %s1716_s12 }
  0x21   : > { %p1719_p8 = pnand %p1717_p7, %p1705_p0  ;;  %p1726_p5 = por %p1725_p6, %p1724_p9 }
  0x23   : > { %p1720_p11 = pneg %p1719_p8 }
  0x25   : > { %p1727_p10 = pnand %p1726_p5, %p1720_p11 }
  0x27   : > { %1730 = shalt.err (!%p1727_p10)
}
  0x28   : > { %s1800_s13 = smov 128   ;;  %s1801_s14 = smov 8  }
  0x29   : > { %1655 = dma.hbm_to_vmem [thread:$0]  (!%p1890_p12), %s2197_s1, 2304, %s151_s29, [#allocation3], %s1800_s13, %s1800_s13, %s1801_s14  }
  0x2a   : > { %p2208_p13 = scmp.ne.s32.totalorder %s2206_s27, 0 }
  0x2b   : > { %p2209_p1 = scmp.eq.s32.totalorder (!%p2208_p13), %s1854_s19, 0 }
  0x2c   : > { %181 = sbr.rel (%p2208_p13) target bundleno = 1237 (0x4d5), region = 36 }
  0x33   : > { %1776 = dma.done.wait (%p2209_p1), [#allocation3], 2304   ;;  %p2210_p0 = pmov %p2209_p1 }
  0x34   : > { %s207_s23 = smul.u32 3, %s1854_s19  ;;  %v214_v0 = vlaneseq  ;;  %v1802_v1 = vmov 0.0|0.0   ;;  %vm1803_vm0 = vmmov 0   ;;  %v1804_v2 = vmov 0.0   ;;  %v250_v6 = vld [vmem:[#allocation2 + $0x10] sm:$0xff]  ;;  %v251_v7 = vld [vmem:[#allocation2 + $0x18] sm:$0xff] }
  0x35   : > { %1778 = vsyncadd (%p2210_p0), [#allocation3], 4294964992  ;;  %1618 = vmatprep.subr.bf16.mxu1 %v1802_v1  ;;  %1615 = vmatprep.subr.bf16.mxu0 %v1802_v1  ;;  %v259_v8 = vld [vmem:[#allocation2] sm:$0xff]  ;;  %v1619_v9 = vpack.c.bf16 %v251_v7, %v250_v6  ;;  %v260_v10 = vld [vmem:[#allocation2 + $0x8] sm:$0xff]  ;;  %v1955_v20 = vrot.slane %v1804_v2, 7  ;;  %vm261_vm2 = vcmask 130048  }
  0x36   : > { %1502 = vmatprep.mubr.msk.f32.mxu1 %vm1803_vm0, %v1804_v2  ;;  %1489 = vmatprep.mubr.msk.f32.mxu0 %vm1803_vm0, %v1804_v2  ;;  %p208_p5 = scmp.lt.s32.totalorder %s207_s23, 5  ;;  %v1923_v3 = vshrl.u32 %v214_v0, 7  ;;  %v1935_v11 = vld [vmem:[%s2198_s2] sm:$0xff]  ;;  %v1616_v13 = vpack.c.bf16 %v260_v10, %v259_v8  ;;  %v468_v27 = vld [vmem:[#allocation2 + $0x30] sm:$0xff]  ;;  %v469_v28 = vld [vmem:[#allocation2 + $0x38] sm:$0xff]  ;;  %s204_s13 = sand.u32 1, %s1789_s16  }
  0x37   : > { %1620 = vmatpush3.bf16.msra.mxu1 %v1619_v9  ;;  %v1625_v29 = vpack.c.bf16 %v469_v28, %v468_v27  ;;  %v477_v30 = vld [vmem:[#allocation2 + $0x20] sm:$0xff]  ;;  %v478_v31 = vld [vmem:[#allocation2 + $0x28] sm:$0xff]  ;;  %s1645_s14 = smul.u32 24, %s204_s13  ;;  %s2155_s6 = scalar_lea.sflag [#allocation4], %s204_s13 }
  0x38   : > { %s2218_s23 = smov (!%p208_p5, %s207_s23), 5  ;;  %v228_v4 = vsub.s32 0, %v1923_v3  ;;  %v235_v5 = vsub.s32 1, %v1923_v3  ;;  %1617 = vmatpush3.bf16.msra.mxu0 %v1616_v13  ;;  %1624 = vmatprep.subr.bf16.mxu1 %v1802_v1  ;;  %vm255_vm1 = vcmp.lt.s32.totalorder %v1923_v3, 1  ;;  %v1622_v32 = vpack.c.bf16 %v478_v31, %v477_v30  ;;  %v668_v60 = vld [vmem:[#allocation2 + $0x40] sm:$0xff]  ;;  %v669_v61 = vld [vmem:[#allocation2 + $0x48] sm:$0xff] }
  0x39   : > { %s1403_s27 = sshll.u32 %s2218_s23, 3  ;;  %1621 = vmatprep.subr.bf16.mxu0 %v1802_v1  ;;  %v442_v36 = vsub.s32 2, %v1923_v3  ;;  %v452_v41 = vsub.s32 3, %v1923_v3  ;;  %v459_v46 = vsub.s32 4, %v1923_v3  ;;  %v1628_v0 = vpack.c.bf16 %v669_v61, %v668_v60  ;;  %s206_s23 = scalar_lea.vmem [#allocation5], %s1645_s14 }
  0x3a   : > { %s1930_s30 = scalar_lea.vmem %s2196_s0, %s1403_s27  ;;  %v229_v14 = vrot.slane %v1935_v11, %v228_v4  ;;  %v236_v15 = vrot.slane %v1935_v11, %v235_v5  ;;  %1503 = vmatmul.mubr.f32.vlgmr.msra.gmra.mrb[0].mxu1 %v1804_v2  ;;  %vm792_vm3 = vcmp.lt.s32.totalorder %v1923_v3, 2  ;;  %s1434_s27 = smul.u32 384, %s1854_s19 }
  0x3b   : > { %v1938_v12 = vld [vmem:[%s1930_s30 + $0x10] sm:$0xff]  ;;  %v1947_v16 = vld [vmem:[%s1930_s30 + $0x8] sm:$0xff]  ;;  %1505 = vmatprep.mubr.msk.f32.mxu1 %vm1803_vm0, %v1804_v2  ;;  %1626 = vmatpush3.bf16.msra.mxu1 %v1625_v29  ;;  %v443_v40 = vrot.slane %v1935_v11, %v442_v36  ;;  %v453_v49 = vrot.slane %v1935_v11, %v452_v41  ;;  %v460_v52 = vrot.slane %v1935_v11, %v459_v46  ;;  %v223_v10 = vld [vmem:[%s1930_s30] sm:$0xff]  ;;  %s1323_s28 = sshll.u32 %s206_s23, 4  ;;  %p2211_p9 = scmp.ne.s32.totalorder %s2204_s25, 0  ;;  %s2148_s28 = int_to_ptr.vmem [resolvable:$true] %s1323_s28 }
  0x3c   : > { %v232_v17 = vmul.f32 %v229_v14, %v1938_v12  ;;  %v231_v18 = vmul.f32 %v229_v14, %v1947_v16  ;;  %1630 = vmatprep.subr.bf16.mxu1 %v1802_v1  ;;  %s2153_s5 = scalar_lea.hbm %s2200_s4, %s1434_s27  ;;  %s1731_s19 = scalar_lea.vmem %s2148_s28, 384 }
  0x3d   : > { %p1732_p6 = scmp.ne.s32.totalorder %s2148_s28, %s1731_s19  ;;  %s1805_s7 = smov [#allocation5]  }
  0x3e   : > { %v239_v19 = vadd.f32 %v236_v15, %v232_v17  ;;  %v238_v21 = vadd.f32 %v236_v15, %v231_v18  ;;  %v787_v15 = vld [vmem:[#allocation2 + $0x60] sm:$0xff]  ;;  %v788_v17 = vld [vmem:[#allocation2 + $0x68] sm:$0xff]  ;;  %s1735_s8 = sshll.u32 %s1805_s7, 4  ;;  %s1736_s8 = int_to_ptr.vmem [resolvable:$false] %s1735_s8 }
  0x3f   : > { %v1634_v18 = vpack.c.bf16 %v788_v17, %v787_v15  ;;  %p1733_p10 = pnand %p1732_p6, %p2211_p9  ;;  %s1737_s9 = scalar_lea.vmem %s1736_s8, 768 }
  0x40   : > { %v254_v22 = vrot.slane %v239_v19, 7  ;;  %v253_v23 = vrot.slane %v238_v21, 7  ;;  %1506 = vmatmul.mubr.msk.f32.gmra.mrb[2].mxu1 %vm261_vm2, %v238_v21  ;;  %p1738_p2 = scmp.lt.s32.totalorder %s2148_s28, %s1736_s8  ;;  %p1739_p3 = scmp.lt.s32.totalorder %s1737_s9, %s1731_s19 }
  0x41   : > { %1508 = vmatprep.mubr.msk.f32.mxu1 %vm1803_vm0, %v1804_v2  ;;  %p1734_p12 = pneg %p1733_p10 }
  0x42   : > { %v258_v24 = vsel %vm255_vm1, %v254_v22, %v1955_v20  ;;  %v257_v25 = vsel %vm255_vm1, %v1955_v20, %v253_v23  ;;  %v256_v26 = vsel %vm255_vm1, %v253_v23, %v254_v22  ;;  %v659_v22 = vsub.s32 5, %v1923_v3  ;;  %p1740_p4 = por %p1739_p3, %p1738_p2 }
  0x43   : > { %1490 = vmatmul.mubr.msk.f32.vlgmr.msra.gmra.mrb[0].mxu0 %vm261_vm2, %v258_v24 }
  0x44   : > { %1492 = vmatprep.mubr.msk.f32.mxu0 %vm1803_vm0, %v1804_v2  ;;  %1509 = vmatmul.mubr.msk.f32.gmra.mrb[4].mxu1 %vm261_vm2, %v239_v19  ;;  %v798_v19 = vld [vmem:[#allocation2 + $0x58] sm:$0xff]  ;;  %p1741_p7 = pnand %p1740_p4, %p1734_p12 }
  0x45   : > { %1528 = vmatprep.mubr.msk.f32.mxu1 %vm1803_vm0, %v1804_v2  ;;  %1623 = vmatpush3.bf16.msra.mxu0 %v1622_v32 }
  0x46   : > { %1627 = vmatprep.subr.bf16.mxu0 %v1802_v1 }
  0x47   : > { %1493 = vmatmul.mubr.msk.f32.gmra.mrb[2].mxu0 %vm261_vm2, %v257_v25  ;;  %v660_v25 = vrot.slane %v1935_v11, %v659_v22 }
  0x48   : > { %1495 = vmatprep.mubr.msk.f32.mxu0 %vm1803_vm0, %v1804_v2  ;;  %1529 = vmatmul.mubr.f32.vlgmr.msra.gmra.mrb[6].mxu1 %v1804_v2 }
  0x49   : > { %1531 = vmatprep.mubr.msk.f32.mxu1 %vm1803_vm0, %v1804_v2 }
  0x4b   : > { %1496 = vmatmul.mubr.msk.f32.gmra.mrb[4].mxu0 %vm261_vm2, %v256_v26 }
  0x4c   : > { %1515 = vmatprep.mubr.msk.f32.mxu0 %vm1803_vm0, %v1804_v2 }
 0x10d   : > { %v426_v33 = vpop.f32.mrb[0].mxu1 }
 0x10e   : > { %v1504_v34 = vpop.f32.mrb[1].mxu1  ;;  %v672_v33 = vsub.s32 6, %v1923_v3 }
 0x113   : > { %v431_v35 = vpop.f32.mrb[2].mxu1 }
 0x114   : > { %v1507_v38 = vpop.f32.mrb[3].mxu1 }
 0x115   : > { %v673_v38 = vrot.slane %v1935_v11, %v672_v33 }
 0x116   : > { %v337_v37 = vpop.f32.mrb[0].mxu0 }
 0x117   : > { %v1491_v39 = vpop.f32.mrb[1].mxu0  ;;  %v436_v42 = vpop.f32.mrb[4].mxu1 }
 0x118   : > { %v1510_v44 = vpop.f32.mrb[5].mxu1 }
 0x11a   : > { %v342_v43 = vpop.f32.mrb[2].mxu0 }
 0x11b   : > { %v432_v45 = vadd.f32 %v431_v35, %v342_v43  ;;  %v1494_v47 = vpop.f32.mrb[3].mxu0  ;;  %v643_v13 = vpop.f32.mrb[6].mxu1 }
 0x11c   : > { %v1530_v14 = vpop.f32.mrb[7].mxu1  ;;  %v771_v47 = vsub.s32 7, %v1923_v3 }
 0x11d   : > { %v445_v48 = vadd.f32 %v443_v40, %v432_v45 }
 0x11e   : > { %v347_v50 = vpop.f32.mrb[4].mxu0 }
 0x11f   : > { %v448_v51 = vmax.f32 %v445_v48, 0.0  ;;  %v437_v53 = vadd.f32 %v436_v42, %v347_v50  ;;  %v1497_v54 = vpop.f32.mrb[5].mxu0 }
 0x121   : > { %v455_v55 = vmul.f32 %v453_v49, %v448_v51  ;;  %v446_v56 = vadd.f32 %v443_v40, %v437_v53  ;;  %v2051_v53 = vld [vmem:[%s2198_s2 + $0x8] sm:$0x1f] }
 0x122   : > { %v990_v33 = vrot.slane %v2051_v53, %v442_v36 }
 0x123   : > { %v462_v57 = vadd.f32 %v460_v52, %v455_v55  ;;  %v449_v58 = vmax.f32 %v446_v56, 0.0  ;;  %v772_v55 = vrot.slane %v1935_v11, %v771_v47 }
 0x125   : > { %v456_v59 = vmul.f32 %v453_v49, %v449_v58  ;;  %1532 = vmatmul.mubr.msk.f32.gmra.mrb[8].mxu1 %vm261_vm2, %v462_v57  ;;  %v471_v6 = vrot.slane %v462_v57, 7 }
 0x126   : > { %1534 = vmatprep.mubr.msk.f32.mxu1 %vm1803_vm0, %v1804_v2 }
 0x127   : > { %v463_v62 = vadd.f32 %v460_v52, %v456_v59  ;;  %v474_v9 = vsel %vm255_vm1, %v1955_v20, %v471_v6  ;;  %v779_v59 = vrot.slane %v2051_v53, %v228_v4 }
 0x129   : > { %v472_v63 = vrot.slane %v463_v62, 7  ;;  %1535 = vmatmul.mubr.msk.f32.gmra.mrb[10].mxu1 %vm261_vm2, %v463_v62 }
 0x12a   : > { %1554 = vmatprep.mubr.msk.f32.mxu1 %vm1803_vm0, %v1804_v2 }
 0x12b   : > { %v475_v7 = vsel %vm255_vm1, %v472_v63, %v1955_v20  ;;  %v473_v8 = vsel %vm255_vm1, %v471_v6, %v472_v63 }
 0x12c   : > { %1516 = vmatmul.mubr.msk.f32.vlgmr.msra.gmra.mrb[6].mxu0 %vm261_vm2, %v475_v7 }
 0x12d   : > { %1629 = vmatpush3.bf16.msra.mxu0 %v1628_v0  ;;  %1518 = vmatprep.mubr.msk.f32.mxu0 %vm1803_vm0, %v1804_v2 }
 0x12e   : > { %1633 = vmatprep.subr.bf16.mxu0 %v1802_v1 }
 0x130   : > { %1519 = vmatmul.mubr.msk.f32.gmra.mrb[8].mxu0 %vm261_vm2, %v474_v9 }
 0x131   : > { %1521 = vmatprep.mubr.msk.f32.mxu0 %vm1803_vm0, %v1804_v2 }
 0x134   : > { %1522 = vmatmul.mubr.msk.f32.gmra.mrb[10].mxu0 %vm261_vm2, %v473_v8  ;;  %v789_v8 = vrot.slane %v1804_v2, 6 }
 0x135   : > { %1541 = vmatprep.mubr.msk.f32.mxu0 %vm1803_vm0, %v1804_v2 }
 0x138   : > { %1542 = vmatmul.mubr.msk.f32.vlgmr.msra.gmra.mrb[12].mxu0 %vm261_vm2, %v223_v10 }
 0x139   : > { %1544 = vmatprep.mubr.msk.f32.mxu0 %vm1803_vm0, %v1804_v2  ;;  %1635 = vmatpush3.bf16.msra.mxu0 %v1634_v18  ;;  %v1005_v18 = vld [vmem:[#allocation2 + $0x80] sm:$0xff] }
 0x13a   : > { %1639 = vmatprep.subr.bf16.mxu0 %v1802_v1 }
 0x13c   : > { %1545 = vmatmul.mubr.msk.f32.gmra.mrb[14].mxu0 %vm261_vm2, %v1947_v16  ;;  %v797_v16 = vld [vmem:[#allocation2 + $0x50] sm:$0xff] }
 0x13d   : > { %1547 = vmatprep.mubr.msk.f32.mxu0 %vm1803_vm0, %v1804_v2  ;;  %v1631_v20 = vpack.c.bf16 %v798_v19, %v797_v16  ;;  %v1006_v16 = vld [vmem:[#allocation2 + $0x88] sm:$0xff] }
 0x13e   : > { %v1640_v19 = vpack.c.bf16 %v1006_v16, %v1005_v18 }
 0x13f   : > { %1632 = vmatpush3.bf16.msra.mxu1 %v1631_v20  ;;  %v1014_v20 = vld [vmem:[#allocation2 + $0x70] sm:$0xff] }
 0x140   : > { %1548 = vmatmul.mubr.msk.f32.gmra.mrb[16].mxu0 %vm261_vm2, %v1938_v12  ;;  %1636 = vmatprep.subr.bf16.mxu1 %v1802_v1 }
 0x141   : > { %1567 = vmatprep.mubr.msk.f32.mxu0 %vm1803_vm0, %v1804_v2 }
 0x144   : > { %1568 = vmatmul.mubr.f32.vlgmr.msra.gmra.mrb[18].mxu0 %v1804_v2 }
 0x145   : > { %1570 = vmatprep.mubr.msk.f32.mxu0 %vm1803_vm0, %v1804_v2  ;;  %1641 = vmatpush3.bf16.msra.mxu0 %v1640_v19 }
 0x1f8   : > { %v648_v12 = vpop.f32.mrb[8].mxu1 }
 0x1f9   : > { %v1533_v21 = vpop.f32.mrb[9].mxu1 }
 0x1fc   : > { %v653_v23 = vpop.f32.mrb[10].mxu1 }
 0x1fd   : > { %v1536_v24 = vpop.f32.mrb[11].mxu1 }
 0x1ff   : > { %v554_v26 = vpop.f32.mrb[6].mxu0 }
 0x200   : > { %v644_v27 = vadd.f32 %v643_v13, %v554_v26  ;;  %v1517_v28 = vpop.f32.mrb[7].mxu0 }
 0x201   : > { %v980_v28 = vrot.slane %v2051_v53, %v235_v5 }
 0x202   : > { %v661_v29 = vadd.f32 %v660_v25, %v644_v27 }
 0x203   : > { %v559_v30 = vpop.f32.mrb[8].mxu0 }
 0x204   : > { %v649_v31 = vadd.f32 %v648_v12, %v559_v30  ;;  %v1520_v32 = vpop.f32.mrb[9].mxu0  ;;  %v664_v40 = vmax.f32 %v661_v29, 0.0  ;;  %v1015_v12 = vld [vmem:[#allocation2 + $0x78] sm:$0xff] }
 0x205   : > { %v1637_v21 = vpack.c.bf16 %v1015_v12, %v1014_v20 }
 0x206   : > { %v662_v42 = vadd.f32 %v660_v25, %v649_v31 }
 0x207   : > { %v564_v34 = vpop.f32.mrb[10].mxu0 }
 0x208   : > { %v654_v35 = vadd.f32 %v653_v23, %v564_v34  ;;  %v1523_v37 = vpop.f32.mrb[11].mxu0  ;;  %v665_v49 = vmax.f32 %v662_v42, 0.0 }
 0x20a   : > { %v663_v50 = vadd.f32 %v660_v25, %v654_v35  ;;  %v997_v35 = vrot.slane %v2051_v53, %v452_v41 }
 0x20b   : > { %v749_v39 = vpop.f32.mrb[12].mxu0 }
 0x20c   : > { %v750_v43 = vadd.f32 %v749_v39, %v673_v38  ;;  %v1543_v44 = vpop.f32.mrb[13].mxu0  ;;  %v666_v57 = vmax.f32 %v663_v50, 0.0 }
 0x20e   : > { %v2045_v45 = vadd.f32 %v750_v43, %v664_v40 }
 0x20f   : > { %v754_v48 = vpop.f32.mrb[14].mxu0 }
 0x210   : > { %v755_v51 = vadd.f32 %v754_v48, %v673_v38  ;;  %v1546_v52 = vpop.f32.mrb[15].mxu0 }
 0x211   : > { %v1210_v52 = vld [vmem:[%s2199_s3] sm:$0xff] }
 0x212   : > { %v2053_v54 = vadd.f32 %v755_v51, %v665_v49 }
 0x213   : > { %v759_v56 = vpop.f32.mrb[16].mxu0 }
 0x214   : > { %v767_v58 = vmax.f32 %v2053_v54, 0.0  ;;  %v760_v60 = vadd.f32 %v759_v56, %v673_v38  ;;  %v1549_v61 = vpop.f32.mrb[17].mxu0  ;;  %v1427_v54 = vld [vmem:[%s2199_s3 + $0x10] ss:$0 sm:$0xff] }
 0x216   : > { %v774_v62 = vmul.f32 %v772_v55, %v767_v58  ;;  %v2062_v63 = vadd.f32 %v760_v60, %v666_v57 }
 0x217   : > { %v963_v15 = vpop.f32.mrb[18].mxu0 }
 0x218   : > { %v781_v0 = vadd.f32 %v779_v59, %v774_v62  ;;  %v768_v6 = vmax.f32 %v2062_v63, 0.0  ;;  %v1569_v17 = vpop.f32.mrb[19].mxu0  ;;  %v1197_v62 = vrot.slane %v2051_v53, %v459_v46 }
 0x21a   : > { %v775_v11 = vmul.f32 %v772_v55, %v768_v6  ;;  %1571 = vmatmul.mubr.msk.f32.gmra.mrb[20].mxu0 %vm261_vm2, %v781_v0  ;;  %v790_v10 = vrot.slane %v781_v0, 6  ;;  %v1211_v55 = vld [vmem:[%s2199_s3 + $0x8] sm:$0xff] }
 0x21b   : > { %1573 = vmatprep.mubr.msk.f32.mxu0 %vm1803_vm0, %v1804_v2  ;;  %v1643_v56 = vpack.c.bf16 %v1211_v55, %v1210_v52 }
 0x21c   : > { %v782_v7 = vadd.f32 %v779_v59, %v775_v11  ;;  %v794_v13 = vsel %vm792_vm3, %v789_v8, %v790_v10 }
 0x21e   : > { %v791_v4 = vrot.slane %v782_v7, 6  ;;  %1574 = vmatmul.mubr.msk.f32.gmra.mrb[22].mxu0 %vm261_vm2, %v782_v7 }
 0x21f   : > { %1593 = vmatprep.mubr.msk.f32.mxu0 %vm1803_vm0, %v1804_v2 }
 0x220   : > { %v795_v9 = vsel %vm792_vm3, %v791_v4, %v789_v8  ;;  %v793_v14 = vsel %vm792_vm3, %v790_v10, %v791_v4 }
 0x221   : > { %1555 = vmatmul.mubr.msk.f32.vlgmr.msra.gmra.mrb[12].mxu1 %vm261_vm2, %v795_v9  ;;  %v766_v9 = vmax.f32 %v2045_v45, 0.0 }
 0x222   : > { %1557 = vmatprep.mubr.msk.f32.mxu1 %vm1803_vm0, %v1804_v2  ;;  %1594 = vmatmul.mubr.f32.vlgmr.msra.gmra.mrb[24].mxu0 %v1804_v2 }
 0x223   : > { %1596 = vmatprep.mubr.msk.f32.mxu0 %vm1803_vm0, %v1804_v2  ;;  %1638 = vmatpush3.bf16.msra.mxu1 %v1637_v21 }
 0x224   : > { %1642 = vmatprep.subr.bf16.mxu1 %v1802_v1 }
 0x225   : > { %1558 = vmatmul.mubr.msk.f32.gmra.mrb[14].mxu1 %vm261_vm2, %v794_v13 }
 0x226   : > { %1560 = vmatprep.mubr.msk.f32.mxu1 %vm1803_vm0, %v1804_v2 }
 0x229   : > { %1561 = vmatmul.mubr.msk.f32.gmra.mrb[16].mxu1 %vm261_vm2, %v793_v14 }
 0x22a   : > { %1580 = vmatprep.mubr.msk.f32.mxu1 %vm1803_vm0, %v1804_v2 }
 0x2ed   : > { %v968_v22 = vpop.f32.mrb[20].mxu0 }
 0x2ee   : > { %v1572_v23 = vpop.f32.mrb[21].mxu0 }
 0x2f1   : > { %v973_v24 = vpop.f32.mrb[22].mxu0 }
 0x2f2   : > { %v1575_v25 = vpop.f32.mrb[23].mxu0 }
 0x2f4   : > { %v874_v26 = vpop.f32.mrb[12].mxu1 }
 0x2f5   : > { %v1556_v27 = vpop.f32.mrb[13].mxu1  ;;  %v1180_v50 = vpop.f32.mrb[24].mxu0 }
 0x2f6   : > { %v1595_v51 = vpop.f32.mrb[25].mxu0 }
 0x2f8   : > { %v879_v29 = vpop.f32.mrb[14].mxu1 }
 0x2f9   : > { %v969_v30 = vadd.f32 %v968_v22, %v879_v29  ;;  %v1559_v31 = vpop.f32.mrb[15].mxu1 }
 0x2fb   : > { %v982_v32 = vadd.f32 %v980_v28, %v969_v30 }
 0x2fc   : > { %v884_v34 = vpop.f32.mrb[16].mxu1 }
 0x2fd   : > { %v985_v1 = vmax.f32 %v982_v32, 0.0  ;;  %v974_v37 = vadd.f32 %v973_v24, %v884_v34  ;;  %v1562_v38 = vpop.f32.mrb[17].mxu1 }
 0x2ff   : > { %v992_v39 = vmul.f32 %v990_v33, %v985_v1  ;;  %v983_v40 = vadd.f32 %v980_v28, %v974_v37 }
 0x301   : > { %v999_v42 = vadd.f32 %v997_v35, %v992_v39  ;;  %v986_v5 = vmax.f32 %v983_v40, 0.0 }
 0x303   : > { %v993_v43 = vmul.f32 %v990_v33, %v986_v5  ;;  %1597 = vmatmul.mubr.msk.f32.gmra.mrb[26].mxu0 %vm261_vm2, %v999_v42  ;;  %v1008_v47 = vrot.slane %v999_v42, 6 }
 0x304   : > { %1599 = vmatprep.mubr.msk.f32.mxu0 %vm1803_vm0, %v1804_v2 }
 0x305   : > { %v1000_v44 = vadd.f32 %v997_v35, %v993_v43  ;;  %v1011_v49 = vsel %vm792_vm3, %v789_v8, %v1008_v47 }
 0x307   : > { %v1009_v36 = vrot.slane %v1000_v44, 6  ;;  %1600 = vmatmul.mubr.msk.f32.gmra.mrb[28].mxu0 %vm261_vm2, %v1000_v44 }
 0x309   : > { %v1012_v41 = vsel %vm792_vm3, %v1009_v36, %v789_v8  ;;  %v1010_v48 = vsel %vm792_vm3, %v1008_v47, %v1009_v36 }
 0x30a   : > { %1581 = vmatmul.mubr.msk.f32.vlgmr.msra.gmra.mrb[18].mxu1 %vm261_vm2, %v1012_v41 }
 0x30b   : > { %1583 = vmatprep.mubr.msk.f32.mxu1 %vm1803_vm0, %v1804_v2  ;;  %1644 = vmatpush3.bf16.msra.mxu1 %v1643_v56 }
 0x30e   : > { %1584 = vmatmul.mubr.msk.f32.gmra.mrb[20].mxu1 %vm261_vm2, %v1011_v49 }
 0x30f   : > { %1586 = vmatprep.mubr.msk.f32.mxu1 %vm1803_vm0, %v1804_v2 }
 0x312   : > { %1587 = vmatmul.mubr.msk.f32.gmra.mrb[22].mxu1 %vm261_vm2, %v1010_v48 }
 0x313   : > { %1606 = vmatprep.mubr.msk.f32.mxu1 %vm1803_vm0, %v1804_v2 }
 0x3d6   : > { %v1185_v57 = vpop.f32.mrb[26].mxu0 }
 0x3d7   : > { %v1598_v59 = vpop.f32.mrb[27].mxu0 }
 0x3da   : > { %v1190_v60 = vpop.f32.mrb[28].mxu0 }
 0x3db   : > { %v1601_v61 = vpop.f32.mrb[29].mxu0 }
 0x3dd   : > { %v1091_v0 = vpop.f32.mrb[18].mxu1 }
 0x3de   : > { %v1181_v11 = vadd.f32 %v1180_v50, %v1091_v0  ;;  %v1582_v7 = vpop.f32.mrb[19].mxu1 }
 0x3e0   : > { %v1198_v4 = vadd.f32 %v1197_v62, %v1181_v11 }
 0x3e1   : > { %v1096_v8 = vpop.f32.mrb[20].mxu1 }
 0x3e2   : > { %v1201_v10 = vmax.f32 %v1198_v4, 0.0  ;;  %v1186_v13 = vadd.f32 %v1185_v57, %v1096_v8  ;;  %v1585_v14 = vpop.f32.mrb[21].mxu1 }
 0x3e4   : > { %v1204_v15 = vadd.f32 %v1201_v10, %v766_v9  ;;  %v1199_v17 = vadd.f32 %v1197_v62, %v1186_v13 }
 0x3e5   : > { %v1101_v18 = vpop.f32.mrb[22].mxu1 }
 0x3e6   : > { %v1207_v16 = vmax.f32 %v1204_v15, 0.0  ;;  %v1202_v19 = vmax.f32 %v1199_v17, 0.0  ;;  %v1191_v20 = vadd.f32 %v1190_v60, %v1101_v18  ;;  %v1588_v3 = vpop.f32.mrb[23].mxu1 }
 0x3e8   : > { %v1205_v46 = vadd.f32 %v1202_v19, %v767_v58  ;;  %v1200_v53 = vadd.f32 %v1197_v62, %v1191_v20  ;;  %1607 = vmatmul.mubr.msk.f32.vlgmr.msra.gmra.mrb[24].mxu1 %vm261_vm2, %v1207_v16 }
 0x3e9   : > { %1609 = vmatprep.mubr.msk.f32.mxu1 %vm1803_vm0, %v1804_v2 }
 0x3ea   : > { %v1208_v45 = vmax.f32 %v1205_v46, 0.0  ;;  %v1203_v12 = vmax.f32 %v1200_v53, 0.0 }
 0x3ec   : > { %v1206_v21 = vadd.f32 %v1203_v12, %v768_v6  ;;  %1610 = vmatmul.mubr.msk.f32.gmra.mrb[26].mxu1 %vm261_vm2, %v1208_v45 }
 0x3ed   : > { %1612 = vmatprep.mubr.msk.f32.mxu1 %vm1803_vm0, %v1804_v2 }
 0x3ee   : > { %v1209_v22 = vmax.f32 %v1206_v21, 0.0 }
 0x3f0   : > { %1613 = vmatmul.mubr.msk.f32.gmra.mrb[28].mxu1 %vm261_vm2, %v1209_v22 }
 0x4bb   : > { %v1292_v58 = vpop.f32.mrb[24].mxu1 }
 0x4bc   : > { %v1293_v23 = vadd.f32 %v1427_v54, %v1292_v58  ;;  %v1608_v24 = vpop.f32.mrb[25].mxu1 }
 0x4be   : > { %1306 = vst [vmem:[%s206_s23] sm:$0xff] %v1293_v23 }
 0x4bf   : > { %v1297_v63 = vpop.f32.mrb[26].mxu1 }
 0x4c0   : > { %v1298_v6 = vadd.f32 %v1427_v54, %v1297_v63  ;;  %v1611_v2 = vpop.f32.mrb[27].mxu1 }
 0x4c2   : > { %1307 = vst [vmem:[%s206_s23 + $0x8] sm:$0xff] %v1298_v6 }
 0x4c3   : > { %v1302_v25 = vpop.f32.mrb[28].mxu1 }
 0x4c4   : > { %v1303_v26 = vadd.f32 %v1427_v54, %v1302_v25  ;;  %v1614_v27 = vpop.f32.mrb[29].mxu1 }
 0x4c6   : > { %1308 = vst [vmem:[%s206_s23 + $0x10] sm:$0xff] %v1303_v26 }
 0x4c7   : > { %1744 = shalt.err (!%p1741_p7)
}
 0x4c8   : > { %s1745_s10 = scalar_lea.hbm %s2153_s5, 384  ;;  %s1749_s13 = scalar_lea.hbm %s2200_s4, 768 }
 0x4c9   : > { %p1746_p8 = scmp.ne.s32.totalorder %s2153_s5, %s1745_s10  ;;  %p1750_p1 = scmp.lt.u32.totalorder %s2153_s5, %s2200_s4 }
 0x4ca   : > { %p1751_p0 = scmp.lt.u32.totalorder %s1749_s13, %s1745_s10  ;;  %p1753_p6 = scmp.lt.u32.totalorder %s1745_s10, %s2153_s5 }
 0x4cb   : > { %p1747_p11 = pnand %p1746_p8, %p2211_p9 }
 0x4cc   : > { %p1752_p5 = por %p1751_p0, %p1750_p1 }
 0x4cd   : > { %p1748_p13 = pneg %p1747_p11 }
 0x4ce   : > { %p1754_p10 = por %p1753_p6, %p1752_p5 }
 0x4d0   : > { %p1755_p12 = pnand %p1754_p10, %p1748_p13 }
 0x4d2   : > { %1758 = shalt.err (!%p1755_p12)
}
 0x4d3   : > { %s1806_s22 = smov 128   ;;  %s1807_s23 = smov 8  }
 0x4d4   : > { %1650 = dma.vmem_to_hbm [thread:$0]  (%p2211_p9), %s2148_s28, 384, %s2153_s5, %s2155_s6, %s1806_s22, %s1806_s22, %s1807_s23  }
 0x4d5 PF: > { %p1662_p2 = scmp.ge.s32.totalorder %s1797_s18, 2  ;;  %s1338_s27 = sand.u32 1, %s1785_s15  }
 0x4d6   : > { %p2212_p3 = scmp.ne.s32.totalorder %s2205_s26, 0  ;;  %s1339_s29 = scalar_lea.sflag [#allocation4], %s1338_s27 }
 0x4d8   : > { %p1657_p4 = pnand %p1662_p2, %p2212_p3 }
 0x4da   : > { %1780 = dma.done.wait (!%p1657_p4), %s1339_s29, 384  }
 0x4db   : > { %1782 = vsyncadd (!%p1657_p4), %s1339_s29, 4294966912  ;;  %p15_p7 = scmp.ge.s32.totalorder %s1858_s21, 4   ;;  %s2213_s15 = smov %s1789_s16 }
 0x4dc   : > { %s2214_s16 = smov %s1793_s17  ;;  %s2215_s17 = smov %s1869_s24 }
 0x4dd   : > { %s2216_s18 = smov %s1858_s21  ;;  %17 = sbr.rel (!%p15_p7) target bundleno = 4 (0x4), region = 84 }
 0x4e4   :  { %1344 = vsyncpa [#allocation3], 1 }
 0x4e5   :  { %1346 = vsyncpa [#allocation3 + $0x1], 1 }
 0x4e6   :  { %1347 = vsyncpa [#allocation4], 1 }
 0x4e7   :  { %1349 = vsyncpa [#allocation4 + $0x1], 1 }

</bundles_post_ra>
